<compile_context>
chip_gen: v7x
topology: tpu7x:2x2x1
jax: 0.10.0
libtpu: 0.0.40
codegen_flags: <defaults>
</compile_context>

<pallas_src>
from functools import partial

import jax
import jax.numpy as jnp
from jax.experimental import pallas as pl
from jax.experimental.pallas import tpu as pltpu


# ----------------------------------------------------------------------------
# Kernel
# ----------------------------------------------------------------------------
def iaf_kernel(z_ref, w_ref, b_ref, out_ref, logdet_ref, *, eup_bf16=False):
    z = z_ref[...]                                        # (tb, Dp) f32
    Dp = out_ref.shape[-1]

    # Single fused masked autoregressive matmul on the MXU:
    #   (tb, Dp) bf16 @ (Dp, 2*Dp) bf16 -> (tb, 2*Dp) f32
    lin = jnp.dot(z.astype(w_ref.dtype), w_ref[...],
                  preferred_element_type=jnp.float32) + b_ref[...]
    mu_lin = lin[:, :Dp]                                  # lane-aligned split
    s = lin[:, Dp:]

    # act = tanh.  bf16 EUP on v6e/v7x (~2x throughput); f32 elsewhere.
    if eup_bf16:
        mu = jnp.tanh(mu_lin.astype(jnp.bfloat16)).astype(jnp.float32)
    else:
        mu = jnp.tanh(mu_lin)

    # Shortened sigma / log-sigma chain: one exp + one log per element,
    # approx reciprocal is near-free on the EUP.
    #   e        = exp(-|s|)
    #   sigma    = where(s>=0, 1, e) / (1 + e)
    #   log(sig) = min(s, 0) - log(1 + e)     (e in (0,1] -> log1p not needed)
    e = jnp.exp(-jnp.abs(s))
    log_sig = jnp.minimum(s, 0.0) - jnp.log(1.0 + e)
    sig = jnp.where(s >= 0.0, 1.0, e) * pl.reciprocal(1.0 + e, approx=True)

    # z_out = sigma*z + (1-sigma)*mu  ==  mu + sigma*(z - mu)
    out_ref[...] = (mu + sig * (z - mu)).astype(out_ref.dtype)

    # (tb, 1) masked store; negligible at these sizes (kept sublane-major for
    # layout simplicity — lane-dense variant gave only a marginal win here).
    logdet_ref[...] = jnp.sum(log_sig, axis=-1, keepdims=True)


# ----------------------------------------------------------------------------
# One-time parameter prep (per weight update, NOT per forward call)
# ----------------------------------------------------------------------------
def prepare_iaf_params(w_mu, b_mu, w_s, b_s, *, compute_dtype=jnp.bfloat16):
    """Apply the autoregressive mask, fuse the two weight matrices / biases,
    pad D to a multiple of 128 (lane alignment), and cast matmul operands to
    the MXU-native dtype."""
    D = w_mu.shape[0]
    Dp = ((D + 127) // 128) * 128
    # row index = input dim, col index = output dim; output j uses inputs i<j
    mask = (jnp.arange(D)[:, None] < jnp.arange(D)[None, :]).astype(w_mu.dtype)

    w_fused = jnp.zeros((Dp, 2 * Dp), dtype=compute_dtype)
    w_fused = w_fused.at[:D, :D].set((w_mu * mask).astype(compute_dtype))
    w_fused = w_fused.at[:D, Dp:Dp + D].set((w_s * mask).astype(compute_dtype))

    b_fused = jnp.zeros((1, 2 * Dp), dtype=jnp.float32)
    b_fused = b_fused.at[0, :D].set(b_mu.astype(jnp.float32))
    b_fused = b_fused.at[0, Dp:Dp + D].set(b_s.astype(jnp.float32))
    if Dp != D:
        # Padded sigma-columns: large positive bias -> sigma ~= 1 and
        # log(sigma) ~= 0, so padding contributes nothing to logdet and
        # passes the zero-padded z columns straight through.
        b_fused = b_fused.at[0, Dp + D:].set(30.0)
    return w_fused, b_fused


# ----------------------------------------------------------------------------
# Wrapper
# ----------------------------------------------------------------------------
def _device_kind():
    try:
        return jax.devices()[0].device_kind.lower()
    except Exception:
        return ""


def _choose_batch_tile(B, cap=1024, min_steps=1):
    """Largest divisor of B that is <= cap, a multiple of 8 (or the full B),
    and gives at least `min_steps` grid steps."""
    for t in range(min(cap, B), 0, -1):
        if B % t:
            continue
        if t != B and t % 8 != 0:
            continue
        if B // t < min_steps:
            continue
        return t
    return B  # fallback: single full-batch tile (always layout-legal)


def inverse_autoregressive(z, w_fused, b_fused, *, tb=None, eup_bf16=None,
                           single_buffer_weights=None):
    B, D = z.shape
    Dp = w_fused.shape[0]
    assert w_fused.shape == (Dp, 2 * Dp)
    assert b_fused.shape == (1, 2 * Dp)
    assert Dp % 128 == 0 and Dp >= D

    kind = _device_kind()
    is_v7 = ("v7" in kind) or ("7x" in kind)
    if eup_bf16 is None:
        # bf16 EUP only on v6e / v7x; v5e has no bf16 VPU/EUP.
        eup_bf16 = ("v6" in kind) or is_v7

    z_in = jnp.pad(z, ((0, 0), (0, Dp - D))) if Dp != D else z

    if tb is None:
        # v7x has 2 TensorCores: prefer >=2 grid steps when B permits.
        min_steps = 2 if (is_v7 and B >= 16) else 1
        tb = _choose_batch_tile(B, cap=1024, min_steps=min_steps)
    assert B % tb == 0
    grid = (B // tb,)

    # Generation-aware VMEM budget: v7x has 64 MiB/TC, v4/v5e/v6e have 128 MiB.
    if is_v7:
        vmem_limit = 48 << 20
    elif any(g in kind for g in ("v4", "v5", "v6")):
        vmem_limit = 96 << 20
    else:
        vmem_limit = 48 << 20

    # Weight/bias have constant block indices -> their DMA already runs once;
    # for large fused weights (v7x, big D) single-buffer them to halve their
    # VMEM footprint at zero bandwidth cost.
    w_bytes = w_fused.size * jnp.dtype(w_fused.dtype).itemsize
    if single_buffer_weights is None:
        single_buffer_weights = is_v7 and w_bytes >= (8 << 20)
    if single_buffer_weights:
        w_spec = pl.BlockSpec((Dp, 2 * Dp), lambda i: (0, 0),
                              pipeline_mode=pl.Buffered(buffer_count=1))
        b_spec = pl.BlockSpec((1, 2 * Dp), lambda i: (0, 0),
                              pipeline_mode=pl.Buffered(buffer_count=1))
    else:
        w_spec = pl.BlockSpec((Dp, 2 * Dp), lambda i: (0, 0))
        b_spec = pl.BlockSpec((1, 2 * Dp), lambda i: (0, 0))

    out, logdet = pl.pallas_call(
        partial(iaf_kernel, eup_bf16=eup_bf16),
        out_shape=(
            jax.ShapeDtypeStruct((B, Dp), z.dtype),
            jax.ShapeDtypeStruct((B, 1), jnp.float32),
        ),
        grid_spec=pltpu.PrefetchScalarGridSpec(
            num_scalar_prefetch=0,
            grid=grid,
            in_specs=[
                pl.BlockSpec((tb, Dp), lambda i: (i, 0)),   # z tile
                w_spec,                                     # fused W (bf16)
                b_spec,                                     # fused bias (f32)
            ],
            out_specs=[
                pl.BlockSpec((tb, Dp), lambda i: (i, 0)),
                pl.BlockSpec((tb, 1), lambda i: (i, 0)),
            ],
        ),
        compiler_params=pltpu.CompilerParams(
            dimension_semantics=("parallel",),
            vmem_limit_bytes=vmem_limit,
        ),
    )(z_in, w_fused, b_fused)

    if Dp != D:
        out = out[:, :D]
    return out, logdet


# ----------------------------------------------------------------------------
# Pure-f32 JAX reference (true semantics, no bf16 / approx shortcuts)
# ----------------------------------------------------------------------------
def reference(z, w_mu, b_mu, w_s, b_s):
    D = z.shape[-1]
    mask = (jnp.arange(D)[:, None] < jnp.arange(D)[None, :]).astype(z.dtype)
    mu_lin = z @ (w_mu * mask) + b_mu
    s_lin = z @ (w_s * mask) + b_s
    mu = jnp.tanh(mu_lin)
    sig = jax.nn.sigmoid(s_lin)
    out = sig * z + (1.0 - sig) * mu
    logdet = jnp.sum(jax.nn.log_sigmoid(s_lin), axis=-1, keepdims=True)
    return out, logdet


if __name__ == "__main__":
    B, D = 8, 128   # batch=8 (sublane-aligned), dim_num=128 (lane-aligned)
    key = jax.random.PRNGKey(0)
    kz, kwm, kbm, kws, kbs = jax.random.split(key, 5)

    bound = 1.0 / (D ** 0.5)   # nn.Linear-style deterministic init
    z = jax.random.normal(kz, (B, D), dtype=jnp.float32)
    w_mu = jax.random.uniform(kwm, (D, D), jnp.float32, -bound, bound)
    b_mu = jax.random.uniform(kbm, (D,), jnp.float32, -bound, bound)
    w_s = jax.random.uniform(kws, (D, D), jnp.float32, -bound, bound)
    b_s = jax.random.uniform(kbs, (D,), jnp.float32, -bound, bound)

    # Parameter prep is hoisted out of the forward path (cache per weight update).
    w_fused, b_fused = prepare_iaf_params(w_mu, b_mu, w_s, b_s)

    out, logdet = inverse_autoregressive(z, w_fused, b_fused)
    jax.block_until_ready((out, logdet))

    # Looser tolerances vs. the exact f32 reference: the kernel uses a bf16
    # MXU matmul (+ bf16 tanh on v6e/v7x) with f32 accumulation.
    ref_out, ref_logdet = reference(z, w_mu, b_mu, w_s, b_s)
    assert jnp.allclose(out, ref_out, atol=3e-2, rtol=3e-2), "z_out mismatch"
    assert jnp.allclose(logdet, ref_logdet, atol=1e-1, rtol=2e-2), "logdet mismatch"
    print("KERNEL_OK")
</pallas_src>

<mosaic_0001>
module attributes {stable_mosaic.version = 11 : i64} {
  func.func @iaf_kernel(%arg0: i32, %arg1: memref<8x128xf32, #tpu.memory_space<vmem>>, %arg2: memref<128x256xbf16, #tpu.memory_space<vmem>>, %arg3: memref<1x256xf32, #tpu.memory_space<vmem>>, %arg4: memref<8x128xf32, #tpu.memory_space<vmem>>, %arg5: memref<8x1xf32, #tpu.memory_space<vmem>>) attributes {dimension_semantics = [#tpu.dimension_semantics<parallel>], iteration_bounds = array<i64: 1>, scalar_prefetch = 0 : i64, scratch_operands = 0 : i64, tpu.core_type = #tpu.core_type<tc>, window_params = [{transform_indices = @transform_0, window_bounds = array<i64: 8, 128>}, {pipeline_mode = #tpu.pipeline_mode<synchronous>, transform_indices = @transform_1, window_bounds = array<i64: 128, 256>}, {pipeline_mode = #tpu.pipeline_mode<synchronous>, transform_indices = @transform_2, window_bounds = array<i64: 1, 256>}, {transform_indices = @transform_3, window_bounds = array<i64: 8, 128>}, {transform_indices = @transform_4, window_bounds = array<i64: 8, 1>}]} {
    %c0 = arith.constant 0 : index
    %c0_0 = arith.constant 0 : index
    %0 = vector.load %arg1[%c0, %c0_0] : memref<8x128xf32, #tpu.memory_space<vmem>>, vector<8x128xf32>
    %1 = arith.truncf %0 : vector<8x128xf32> to vector<8x128xbf16>
    %c0_1 = arith.constant 0 : index
    %c0_2 = arith.constant 0 : index
    %2 = vector.load %arg2[%c0_1, %c0_2] : memref<128x256xbf16, #tpu.memory_space<vmem>>, vector<128x256xbf16>
    %cst = arith.constant dense<0.000000e+00> : vector<8x256xf32>
    %3 = tpu.matmul %1, %2, %cst {dimension_numbers = #tpu.dot_dimension_numbers<[1], [0], [0], [1], [0, 0, 1, 1], [], []>} : vector<8x128xbf16>, vector<128x256xbf16>, vector<8x256xf32> -> vector<8x256xf32>
    %c0_3 = arith.constant 0 : index
    %c0_4 = arith.constant 0 : index
    %4 = vector.load %arg3[%c0_3, %c0_4] : memref<1x256xf32, #tpu.memory_space<vmem>>, vector<1x256xf32>
    %5 = vector.broadcast %4 : vector<1x256xf32> to vector<8x256xf32>
    %6 = arith.addf %3, %5 : vector<8x256xf32>
    %7 = vector.extract_strided_slice %6 {offsets = [0, 0], sizes = [8, 128], strides = [1, 1]} : vector<8x256xf32> to vector<8x128xf32>
    %8 = vector.extract_strided_slice %6 {offsets = [0, 128], sizes = [8, 128], strides = [1, 1]} : vector<8x256xf32> to vector<8x128xf32>
    %9 = math.tanh %7 : vector<8x128xf32>
    %10 = math.absf %8 : vector<8x128xf32>
    %cst_5 = arith.constant 0.000000e+00 : f32
    %11 = vector.broadcast %cst_5 : f32 to vector<8x128xf32>
    %12 = arith.subf %11, %10 : vector<8x128xf32>
    %13 = math.exp %12 : vector<8x128xf32>
    %cst_6 = arith.constant 0.000000e+00 : f32
    %14 = vector.broadcast %cst_6 : f32 to vector<8x128xf32>
    %15 = arith.minimumf %8, %14 : vector<8x128xf32>
    %cst_7 = arith.constant 1.000000e+00 : f32
    %16 = vector.broadcast %cst_7 : f32 to vector<8x128xf32>
    %17 = arith.addf %16, %13 : vector<8x128xf32>
    %18 = math.log %17 : vector<8x128xf32>
    %19 = arith.subf %15, %18 : vector<8x128xf32>
    %cst_8 = arith.constant 0.000000e+00 : f32
    %20 = vector.broadcast %cst_8 : f32 to vector<8x128xf32>
    %21 = arith.cmpf oge, %8, %20 : vector<8x128xf32>
    %cst_9 = arith.constant 1.000000e+00 : f32
    %22 = vector.broadcast %cst_9 : f32 to vector<8x128xf32>
    %23 = arith.select %21, %22, %13 : vector<8x128xi1>, vector<8x128xf32>
    %cst_10 = arith.constant 1.000000e+00 : f32
    %24 = vector.broadcast %cst_10 : f32 to vector<8x128xf32>
    %25 = arith.addf %24, %13 : vector<8x128xf32>
    %26 = tpu.reciprocal %25 {approx = true} : vector<8x128xf32> -> vector<8x128xf32>
    %27 = arith.mulf %23, %26 : vector<8x128xf32>
    %28 = arith.subf %0, %9 : vector<8x128xf32>
    %29 = arith.mulf %27, %28 : vector<8x128xf32>
    %30 = arith.addf %9, %29 : vector<8x128xf32>
    %c0_11 = arith.constant 0 : index
    %c0_12 = arith.constant 0 : index
    %31 = vector.load %arg4[%c0_11, %c0_12] : memref<8x128xf32, #tpu.memory_space<vmem>>, vector<8x128xf32>
    tpu.vector_store %arg4[%c0_11, %c0_12], %30 {strides = array<i32>} : memref<8x128xf32, #tpu.memory_space<vmem>>, vector<8x128xf32>,
    %cst_13 = arith.constant dense<0.000000e+00> : vector<8xf32>
    %32 = vector.multi_reduction <add>, %19, %cst_13 [1] : vector<8x128xf32> to vector<8xf32>
    %33 = vector.shape_cast %32 : vector<8xf32> to vector<8x1xf32>
    %c0_14 = arith.constant 0 : index
    %c0_15 = arith.constant 0 : index
    %34 = vector.load %arg5[%c0_14, %c0_15] : memref<8x1xf32, #tpu.memory_space<vmem>>, vector<8x1xf32>
    tpu.vector_store %arg5[%c0_14, %c0_15], %33 {strides = array<i32>} : memref<8x1xf32, #tpu.memory_space<vmem>>, vector<8x1xf32>,
    return
  }
  func.func @transform_0(%arg0: i32) -> (i32, i32) {
    %c0_i32 = arith.constant 0 : i32
    %c0_i32_0 = arith.constant 0 : i32
    return %arg0, %c0_i32 : i32, i32
  }
  func.func @transform_1(%arg0: i32) -> (i32, i32) {
    %c0_i32 = arith.constant 0 : i32
    %c0_i32_0 = arith.constant 0 : i32
    %c0_i32_1 = arith.constant 0 : i32
    return %c0_i32, %c0_i32_0 : i32, i32
  }
  func.func @transform_2(%arg0: i32) -> (i32, i32) {
    %c0_i32 = arith.constant 0 : i32
    %c0_i32_0 = arith.constant 0 : i32
    %c0_i32_1 = arith.constant 0 : i32
    return %c0_i32, %c0_i32_0 : i32, i32
  }
  func.func @transform_3(%arg0: i32) -> (i32, i32) {
    %c0_i32 = arith.constant 0 : i32
    %c0_i32_0 = arith.constant 0 : i32
    return %arg0, %c0_i32 : i32, i32
  }
  func.func @transform_4(%arg0: i32) -> (i32, i32) {
    %c0_i32 = arith.constant 0 : i32
    %c0_i32_0 = arith.constant 0 : i32
    return %arg0, %c0_i32 : i32, i32
  }
}

</mosaic_0001>

<bundles_post_ra>
// kernel: tpu_custom_call.1
= control target key start
LH: loop header
LB: loop body
LE: loop exit
PB: predicated region body
PF: predicated region fallthrough
CT: control target
= control target key end

     0   :  { %10 = vsyncpa [#allocation3], 0  ;;  %s443_s0 = inlined_call_operand.hbm [shape: f32[8,128], index: 0, kind: input, shape index: {}]   ;;  %s444_s1 = inlined_call_operand.hbm [shape: bf16[128,256], index: 1, kind: input, shape index: {}]   ;;  %s445_s2 = inlined_call_operand.vmem [shape: f32[1,256], index: 2, kind: input, shape index: {}]   ;;  %s446_s3 = inlined_call_operand.hbm [shape: f32[8,128], index: 3, kind: output, shape index: {0}]   ;;  %s447_s4 = inlined_call_operand.vmem [shape: f32[8,1], index: 4, kind: output, shape index: {1}]  }
   0x1   :  { %11 = vsyncpa [#allocation6], 0 }
   0x2   :  { %12 = vsyncpa [#allocation4], 0  ;;  %s363_s15 = smov [#allocation2]   ;;  %s364_s17 = smov [#allocation5]  }
   0x3   :  { %s19_s16 = sshll.u32 %s363_s15, 4  ;;  %s28_s18 = sshll.u32 %s364_s17, 4  ;;  %s20_s16 = int_to_ptr.vmem [resolvable:$true] %s19_s16  ;;  %s394_s18 = int_to_ptr.vmem [resolvable:$true] %s28_s18 }
   0x4   :  { %s291_s21 = scalar_lea.hbm %s443_s0, 128 }
   0x5   :  { %p292_p0 = scmp.ne.s32.totalorder %s443_s0, %s291_s21  ;;  %p295_p1 = scmp.lt.u32.totalorder %s291_s21, %s443_s0 }
   0x7   :  { %p297_p2 = pnand %p295_p1, %p292_p0 }
   0x9   :  { %300 = shalt.err (!%p297_p2)
}
   0xa   :  { %s301_s26 = scalar_lea.vmem %s20_s16, 128  ;;  %p306_p4 = scmp.lt.s32.totalorder %s20_s16, %s20_s16 }
   0xb   :  { %p302_p3 = scmp.ne.s32.totalorder %s20_s16, %s301_s26  ;;  %p307_p5 = scmp.lt.s32.totalorder %s301_s26, %s301_s26 }
   0xd   :  { %p308_p6 = por %p307_p5, %p306_p4 }
   0xf   :  { %p309_p7 = pnand %p308_p6, %p302_p3 }
  0x11   :  { %312 = shalt.err (!%p309_p7)
}
  0x12   :  { %22 = dma.hbm_to_vmem [thread:$0]  %s443_s0, 128, %s20_s16, [#allocation3]  }
  0x13   :  { %s313_s5 = scalar_lea.hbm %s444_s1, 2048 }
  0x14   :  { %p314_p8 = scmp.ne.s32.totalorder %s444_s1, %s313_s5  ;;  %p317_p9 = scmp.lt.u32.totalorder %s313_s5, %s444_s1 }
  0x16   :  { %p319_p10 = pnand %p317_p9, %p314_p8 }
  0x18   :  { %322 = shalt.err (!%p319_p10)
}
  0x19   :  { %s323_s10 = scalar_lea.vmem %s394_s18, 2048  ;;  %p328_p12 = scmp.lt.s32.totalorder %s394_s18, %s394_s18 }
  0x1a   :  { %p324_p11 = scmp.ne.s32.totalorder %s394_s18, %s323_s10  ;;  %p329_p13 = scmp.lt.s32.totalorder %s323_s10, %s323_s10 }
  0x1c   :  { %p330_p0 = por %p329_p13, %p328_p12 }
  0x1e   :  { %p331_p1 = pnand %p330_p0, %p324_p11 }
  0x20   :  { %334 = shalt.err (!%p331_p1)
}
  0x21   :  { %s365_s0 = smov 128   ;;  %s366_s11 = smov 8  }
  0x22   :  { %34 = dma.hbm_to_vmem [thread:$0]  %s444_s1, 2048, %s394_s18, [#allocation6], %s365_s0, %s365_s0, %s366_s11  }
  0x23   :  { %357 = dma.done.wait [#allocation3], 128  }
  0x24   :  { %358 = vsyncadd [#allocation3], 4294967168 }
  0x25   :  { %359 = dma.done.wait [#allocation6], 2048  }
  0x26   :  { %360 = vsyncadd [#allocation6], 4294965248  ;;  %v367_v0 = vmov 0   ;;  %v259_v1 = vld [vmem:[#allocation5 + $0x4] ss:$8 sps:$4 sm:$0xff]   ;;  %v44_v17 = vld [vmem:[#allocation2] sm:$0xff]  ;;  %v64_v19 = vlaneseq }
  0x27   :  { %186 = vmatprep.mubr.bf16.mxu0 %v367_v0  ;;  %v261_v2 = vld [vmem:[#allocation5] ss:$8 sps:$4 sm:$0xff]   ;;  %154 = vmatprep.subr.bf16.mxu0 %v259_v1  ;;  %v262_v3 = vld [vmem:[#allocation5 + $0x14] ss:$8 sps:$4 sm:$0xff]   ;;  %v264_v4 = vld [vmem:[#allocation5 + $0x10] ss:$8 sps:$4 sm:$0xff]   ;;  %v45_v18 = vpack.c.bf16 %v44_v17, %v44_v17 }
  0x28   :  { %155 = vmatpush1.bf16.msra.mxu0 %v261_v2  ;;  %v265_v5 = vld [vmem:[#allocation5 + $0x24] ss:$8 sps:$4 sm:$0xff]   ;;  %v267_v6 = vld [vmem:[#allocation5 + $0x20] ss:$8 sps:$4 sm:$0xff]   ;;  %v268_v7 = vld [vmem:[#allocation5 + $0x34] ss:$8 sps:$4 sm:$0xff]  }
  0x29   :  { %156 = vmatprep.subr.bf16.mxu0 %v262_v3  ;;  %v270_v8 = vld [vmem:[#allocation5 + $0x30] ss:$8 sps:$4 sm:$0xff]   ;;  %v271_v9 = vld [vmem:[#allocation5 + $0x44] ss:$8 sps:$4 sm:$0xff]   ;;  %v273_v10 = vld [vmem:[#allocation5 + $0x40] ss:$8 sps:$4 sm:$0xff]  }
  0x2a   :  { %v274_v11 = vld [vmem:[#allocation5 + $0x54] ss:$8 sps:$4 sm:$0xff]   ;;  %v276_v12 = vld [vmem:[#allocation5 + $0x50] ss:$8 sps:$4 sm:$0xff]   ;;  %v277_v13 = vld [vmem:[#allocation5 + $0x64] ss:$8 sps:$4 sm:$0xff]  }
  0x2b   :  { %v279_v14 = vld [vmem:[#allocation5 + $0x60] ss:$8 sps:$4 sm:$0xff]   ;;  %v280_v15 = vld [vmem:[#allocation5 + $0x74] ss:$8 sps:$4 sm:$0xff]   ;;  %v282_v16 = vld [vmem:[#allocation5 + $0x70] ss:$8 sps:$4 sm:$0xff]  }
  0x2c   :  { %157 = vmatpush1.bf16.msra.mxu0 %v264_v4  ;;  %v65_v20 = vshrl.u32 %v64_v19, 7  ;;  %v62_v22 = vld [vmem:[%s445_s2] sm:$0x3]  ;;  %s368_s2 = smov [#allocation7]  }
  0x2d   :  { %158 = vmatprep.subr.bf16.mxu0 %v265_v5  ;;  %s223_s15 = sshll.u32 %s368_s2, 4  ;;  %s224_s15 = int_to_ptr.vmem [resolvable:$true] %s223_s15 }
  0x2e   :  { %v70_v21 = vsub.s32 1, %v65_v20  ;;  %v66_v32 = vsub.s32 0, %v65_v20  ;;  %s335_s16 = scalar_lea.vmem %s224_s15, 128  ;;  %p340_p3 = scmp.lt.s32.totalorder %s224_s15, %s224_s15 }
  0x2f   :  { %p336_p2 = scmp.ne.s32.totalorder %s224_s15, %s335_s16  ;;  %p341_p4 = scmp.lt.s32.totalorder %s335_s16, %s335_s16 }
  0x30   :  { %159 = vmatpush1.bf16.msra.mxu0 %v267_v6  ;;  %v71_v23 = vrot.slane %v62_v22, %v70_v21  ;;  %v67_v33 = vrot.slane %v62_v22, %v66_v32 }
  0x31   :  { %160 = vmatprep.subr.bf16.mxu0 %v268_v7  ;;  %p342_p5 = por %p341_p4, %p340_p3 }
  0x33   :  { %p343_p6 = pnand %p342_p5, %p336_p2 }
  0x34   :  { %161 = vmatpush1.bf16.msra.mxu0 %v270_v8 }
  0x35   :  { %162 = vmatprep.subr.bf16.mxu0 %v271_v9 }
  0x38   :  { %163 = vmatpush1.bf16.msra.mxu0 %v273_v10 }
  0x39   :  { %164 = vmatprep.subr.bf16.mxu0 %v274_v11 }
  0x3c   :  { %165 = vmatpush1.bf16.msra.mxu0 %v276_v12 }
  0x3d   :  { %166 = vmatprep.subr.bf16.mxu0 %v277_v13 }
  0x40   :  { %167 = vmatpush1.bf16.msra.mxu0 %v279_v14 }
  0x41   :  { %168 = vmatprep.subr.bf16.mxu0 %v280_v15 }
  0x44   :  { %169 = vmatpush1.bf16.msra.mxu0 %v282_v16 }
  0x47   :  { %187 = vmatmul.mubr.bf16.vlgmr.msra.gmra.mrb[0].mxu0 %v45_v18 }
 0x11a   :  { %v188_v24 = vpop.f32.mrb[0].mxu0 }
 0x11b   :  { %v190_v25 = vpop.f32.mrb[1].mxu0  ;;  %v189_v34 = vadd.f32 %v188_v24, %v67_v33 }
 0x11c   :  { %v191_v26 = vadd.f32 %v190_v25, %v71_v23  ;;  %v192_v27 = vpop.f32.mrb[2].mxu0 }
 0x11d   :  { %v193_v28 = vpop.f32.mrb[3].mxu0 }
 0x11e   :  { %v196_v29 = vand.u32 2147483647, %v191_v26  ;;  %vm205_vm0 = vcmp.ge.f32.partialorder %v191_v26, 0.0  ;;  %v200_v41 = vmin.f32 %v191_v26, 0.0 }
 0x120   :  { %v197_v30 = vsub.f32 0.0, %v196_v29 }
 0x122   :  { %v198_v31 = vmul.f32 1.442695, %v197_v30 }
 0x124   :  { %283 = vpow2.f32 %v198_v31 }
 0x125   :  { %285 = vtanh.f32 %v189_v34 }
 0x12e   :  { %v284_v35 = vpop.eup %283 }
 0x12f   :  { %v201_v36 = vadd.f32 1.0, %v284_v35  ;;  %v286_v37 = vpop.eup %285  ;;  %v206_v40 = vsel %vm205_vm0, 1.0, %v284_v35 }
 0x130   :  { %v209_v44 = vsub.f32 %v44_v17, %v286_v37 }
 0x131   :  { %287 = vlog2.f32 %v201_v36 }
 0x132   :  { %289 = vrcp.f32 %v201_v36 }
 0x13b   :  { %v288_v38 = vpop.eup %287 }
 0x13c   :  { %v290_v39 = vpop.eup %289  ;;  %v203_v42 = vmul.f32 0.6931472, %v288_v38 }
 0x13d   :  { %v208_v43 = vmul.f32 %v290_v39, %v206_v40 }
 0x13e   :  { %v204_v45 = vsub.f32 %v200_v41, %v203_v42 }
 0x13f   :  { %v210_v46 = vmul.f32 %v209_v44, %v208_v43 }
 0x140   :  { %213 = vadd.xlane.f32.xlu0 %v204_v45 }
 0x141   :  { %v211_v47 = vadd.f32 %v286_v37, %v210_v46 }
 0x143   :  { %212 = vst [vmem:[#allocation7] sm:$0xff] %v211_v47 }
 0x144   :  { %346 = shalt.err (!%p343_p6)
}
 0x145   :  { %s347_s19 = scalar_lea.hbm %s446_s3, 128 }
 0x146   :  { %p348_p7 = scmp.ne.s32.totalorder %s446_s3, %s347_s19  ;;  %p351_p8 = scmp.lt.u32.totalorder %s347_s19, %s446_s3 }
 0x148   :  { %p353_p9 = pnand %p351_p8, %p348_p7 }
 0x14a   :  { %356 = shalt.err (!%p353_p9)
}
 0x14b   :  { %226 = dma.vmem_to_hbm [thread:$0]  %s224_s15, 128, %s446_s3, [#allocation4]   ;;  %vm215_vm1 = vcmask 7168  }
 0x1cd   :  { %v214_v48 = vpop.xlane.xlu0 %213 }
 0x1ce   :  { %216 = vst.msk [vmem:[%s447_s4] sm:$0xff] %vm215_vm1, %v214_v48 }
 0x1cf   :  { %361 = dma.done.wait [#allocation4], 128  }
 0x1d0   :  { %362 = vsyncadd [#allocation4], 4294967168 }
 0x1d1   :  { %234 = vsyncpa [#allocation3], 1 }
 0x1d2   :  { %235 = vsyncpa [#allocation6], 1 }
 0x1d3   :  { %236 = vsyncpa [#allocation4], 1 }

</bundles_post_ra>
